<compile_context>
chip_gen: v6e
topology: v6e:2x2x1
jax: 0.10.0
libtpu: 0.0.40
codegen_flags: <defaults>
</compile_context>

<pallas_src>
import jax
import jax.numpy as jnp
from jax.experimental import pallas as pl
from jax.experimental.pallas import tpu as pltpu


EMB_SIZE = 50
HALF = EMB_SIZE // 2
FEAT = 2 * EMB_SIZE + EMB_SIZE + 1     # 151
HIDDEN = 128

# Per-row VMEM at the chosen tile (including the 128-lane padding of the narrow
# activation streams and the f32 hidden intermediate):
#   u,i,b,c : 4 * 128 lanes * 2 B  = 1.0 KiB/row   (double-buffered -> 2.0 KiB/row)
#   price   : 128 lanes * 4 B      = 0.5 KiB/row   (double-buffered -> 1.0 KiB/row)
#   h + temps (f32 [tb,128])       ~ 1.0-1.5 KiB/row
# TB=8192 -> ~24 MiB of double-buffered inputs + ~8-12 MiB of intermediates,
# i.e. ~32-36 MiB: above the scoped VMEM defaults (16 MiB v5e / 32 MiB v6e,v7x),
# so vmem_limit_bytes is raised to 48 MiB, which still leaves headroom under the
# 64 MiB physical VMEM per v7x TensorCore (v5e/v6e have 128 MiB physical).
DEFAULT_TB = 8192
VMEM_LIMIT_BYTES = 48 * 1024 * 1024


def _round_up(n, m):
    return ((n + m - 1) // m) * m


def _mlp_kernel(u_ref, it_ref, br_ref, ct_ref, pr_ref,
                w1u_ref, w1i_ref, w1b_ref, w1c_ref, w1p_ref,
                b1_ref, w2t_ref, b2_ref, o_ref):
    # u_ref/it_ref: [TB, 50] bf16   br_ref/ct_ref: [TB, 25] bf16   pr_ref: [TB, 1] f32
    # w1*_ref: matching row-slices of W1 (bf16, price row f32)     b1/w2t: [1, 128] f32
    # b2_ref: (1, 1) f32 in SMEM                                   o_ref: [TB//128, 128] f32
    f32 = jnp.float32
    # First linear as a sum of partial matmuls == matmul of the concatenated
    # 151-wide features (no concat materialized anywhere).  bf16 operands, f32 MXU acc.
    h = jnp.dot(u_ref[...], w1u_ref[...], preferred_element_type=f32)
    h = h + jnp.dot(it_ref[...], w1i_ref[...], preferred_element_type=f32)
    h = h + jnp.dot(br_ref[...], w1b_ref[...], preferred_element_type=f32)
    h = h + jnp.dot(ct_ref[...], w1c_ref[...], preferred_element_type=f32)
    h = h + pr_ref[...] * w1p_ref[...]          # rank-1 price term, f32 on the VPU
    h = jnp.maximum(h + b1_ref[...], 0.0)       # bias + ReLU

    # Second linear (128 -> 1): VPU multiply + XLU lane reduction, emitted as a
    # lane-dense (tb//128, 128) slab (batch rows land on lanes -> unmasked vst).
    tb = h.shape[0]
    hr = h.reshape(tb // 128, 128, HIDDEN)      # splits the sublane-major axis: free
    y = jnp.sum(hr * w2t_ref[...], axis=-1)     # (tb//128, 128)
    o_ref[...] = y + b2_ref[0, 0]


def recommender_forward(params, user, item, brand, category, price, *, block_b=DEFAULT_TB):
    """Embedding gathers in plain JAX (bf16 tables), everything else in the kernel."""
    assert block_b % 1024 == 0 and block_b >= 1024, "block_b must be a multiple of 1024"
    B = user.shape[0]

    # --- batch tiling (tb multiple of 128; tb//128 multiple of 8 whenever tiled) ----
    if B >= 2 * block_b:
        tb = block_b
        b_pad = _round_up(B, tb)
    elif B >= 2048:
        # At least 2 tiles so the "parallel" batch axis splits across both v7x TCs.
        b_pad = _round_up(B, 2048)
        tb = b_pad // 2
    else:
        b_pad = _round_up(max(B, 1), 128)       # lane-dense output needs 128-row groups
        tb = b_pad                              # single tile == full array (layout-legal)
    n_tiles = b_pad // tb

    # --- fold the batch padding into the cheap producers (4 B/row), not x -----------
    pad = b_pad - B
    if pad:
        user = jnp.pad(user, (0, pad))
        item = jnp.pad(item, (0, pad))
        brand = jnp.pad(brand, (0, pad))
        category = jnp.pad(category, (0, pad))
        price = jnp.pad(price, (0, pad))
    # NOTE: padded rows (index 0, price 0) produce valid-looking scores; they are
    # sliced off below and must be masked if anything ever reduces over them.

    # --- gathers emit bf16 directly (tables stored bf16 at init); no concat, no
    #     astype pass, no x materialization ------------------------------------------
    u = jnp.take(params["user_emb"], user, axis=0)        # [b_pad, 50] bf16
    it = jnp.take(params["item_emb"], item, axis=0)       # [b_pad, 50] bf16
    br = jnp.take(params["brand_emb"], brand, axis=0)     # [b_pad, 25] bf16
    ct = jnp.take(params["cat_emb"], category, axis=0)    # [b_pad, 25] bf16
    pr = price.astype(jnp.float32)[:, None]               # [b_pad, 1]  f32 (fidelity)
    # TODO(synk): fuse the gathers into the kernel (PrefetchScalarGridSpec with the
    # index arrays in SMEM + per-tile DMA gathers from HBM tables, batching contiguous
    # index runs per DMA) to also remove these [b_pad, *] HBM round-trips.

    # --- W1 split along its input rows; the concat is realized as a sum of partial
    #     matmuls inside the kernel.  ~40 KB, negligible to cast per call ------------
    w1 = params["w1"]
    w1_u = w1[0:EMB_SIZE].astype(jnp.bfloat16)                          # [50, 128]
    w1_i = w1[EMB_SIZE:2 * EMB_SIZE].astype(jnp.bfloat16)               # [50, 128]
    w1_b = w1[2 * EMB_SIZE:2 * EMB_SIZE + HALF].astype(jnp.bfloat16)    # [25, 128]
    w1_c = w1[2 * EMB_SIZE + HALF:FEAT - 1].astype(jnp.bfloat16)        # [25, 128]
    w1_p = w1[FEAT - 1:FEAT].astype(jnp.float32)                        # [1, 128] f32
    b1 = params["b1"].reshape(1, HIDDEN).astype(jnp.float32)
    w2t = params["w2"].reshape(1, HIDDEN).astype(jnp.float32)           # (128,1) -> (1,128)
    b2 = params["b2"].reshape(1, 1).astype(jnp.float32)                 # SMEM scalar

    cost = pl.CostEstimate(
        flops=2 * b_pad * (FEAT - 1) * HIDDEN + 6 * b_pad * HIDDEN,
        transcendentals=0,
        bytes_accessed=(b_pad * (2 * (FEAT - 1) + 4)          # bf16 emb rows + f32 price
                        + (FEAT - 1) * HIDDEN * 2             # W1 slices (bf16)
                        + 3 * HIDDEN * 4 + 4                  # w1_p, b1, w2t, b2
                        + b_pad * 4),                         # lane-dense output
    )

    rows = lambda bi: (bi, 0)        # batch-tiled streams
    keep = lambda bi: (0, 0)         # constant index_map => block stays resident, no re-DMA

    out = pl.pallas_call(
        _mlp_kernel,
        out_shape=jax.ShapeDtypeStruct((b_pad // 128, 128), jnp.float32),
        grid=(n_tiles,),
        in_specs=[
            pl.BlockSpec((tb, EMB_SIZE), rows),               # u
            pl.BlockSpec((tb, EMB_SIZE), rows),               # item
            pl.BlockSpec((tb, HALF), rows),                   # brand
            pl.BlockSpec((tb, HALF), rows),                   # category
            pl.BlockSpec((tb, 1), rows),                      # price (f32)
            pl.BlockSpec((EMB_SIZE, HIDDEN), keep),           # W1[0:50]
            pl.BlockSpec((EMB_SIZE, HIDDEN), keep),           # W1[50:100]
            pl.BlockSpec((HALF, HIDDEN), keep),               # W1[100:125]
            pl.BlockSpec((HALF, HIDDEN), keep),               # W1[125:150]
            pl.BlockSpec((1, HIDDEN), keep),                  # W1[150:151] (price row, f32)
            pl.BlockSpec((1, HIDDEN), keep),                  # b1
            pl.BlockSpec((1, HIDDEN), keep),                  # w2^T
            pl.BlockSpec(memory_space=pltpu.MemorySpace.SMEM),  # b2 scalar
        ],
        out_specs=pl.BlockSpec((tb // 128, 128), rows),       # lane-dense output slab
        compiler_params=pltpu.CompilerParams(
            dimension_semantics=("parallel",),                # megacore / 2-TC sharding
            vmem_limit_bytes=VMEM_LIMIT_BYTES,
        ),
        cost_estimate=cost,
    )(u, it, br, ct, pr, w1_u, w1_i, w1_b, w1_c, w1_p, b1, w2t, b2)

    return out.reshape(-1)[:B]       # drop batch padding, squeeze(1) -> [B]


def init_params(key, n_users, n_items, n_brands, n_categories, emb_size=EMB_SIZE):
    ks = jax.random.split(key, 8)
    half = emb_size // 2
    in_dim = 2 * emb_size + emb_size + 1     # 151
    lim1 = 1.0 / jnp.sqrt(in_dim)
    lim2 = 1.0 / jnp.sqrt(HIDDEN)
    bf16 = jnp.bfloat16
    return {
        # nn.Embedding default init: N(0, 1).  Stored in bf16 (cast once here) so the
        # gathers emit bf16 directly -- no separate astype pass over x.
        "user_emb": jax.random.normal(ks[0], (n_users, emb_size), jnp.float32).astype(bf16),
        "item_emb": jax.random.normal(ks[1], (n_items, emb_size), jnp.float32).astype(bf16),
        "brand_emb": jax.random.normal(ks[2], (n_brands, half), jnp.float32).astype(bf16),
        "cat_emb": jax.random.normal(ks[3], (n_categories, half), jnp.float32).astype(bf16),
        # nn.Linear default init: U(-1/sqrt(fan_in), 1/sqrt(fan_in)); kept in f32.
        "w1": jax.random.uniform(ks[4], (in_dim, HIDDEN), jnp.float32, -lim1, lim1),
        "b1": jax.random.uniform(ks[5], (HIDDEN,), jnp.float32, -lim1, lim1),
        "w2": jax.random.uniform(ks[6], (HIDDEN, 1), jnp.float32, -lim2, lim2),
        "b2": jax.random.uniform(ks[7], (1,), jnp.float32, -lim2, lim2),
    }


def reference_forward(params, user, item, brand, category, price, *, match_kernel_rounding=False):
    f32 = jnp.float32
    u = jnp.take(params["user_emb"], user, axis=0).astype(f32)
    it = jnp.take(params["item_emb"], item, axis=0).astype(f32)
    br = jnp.take(params["brand_emb"], brand, axis=0).astype(f32)
    ct = jnp.take(params["cat_emb"], category, axis=0).astype(f32)
    x = jnp.concatenate([u, it, br, ct, price.astype(f32)[:, None]], axis=1)   # [B, 151]
    w1 = params["w1"]
    if match_kernel_rounding:
        # Kernel stores the embedding-facing W1 rows in bf16; the price row stays f32.
        w1 = jnp.concatenate(
            [w1[:FEAT - 1].astype(jnp.bfloat16).astype(f32), w1[FEAT - 1:]], axis=0)
    h = jnp.maximum(x @ w1 + params["b1"], 0.0)
    return (h @ params["w2"] + params["b2"]).reshape(-1)


if __name__ == "__main__":
    key = jax.random.PRNGKey(0)
    n_users, n_items, n_brands, n_categories = 20, 30, 10, 6
    B = 8

    pkey, ukey, ikey, bkey, ckey, prkey = jax.random.split(key, 6)
    params = init_params(pkey, n_users, n_items, n_brands, n_categories)

    user = jax.random.randint(ukey, (B,), 0, n_users, dtype=jnp.int32)
    item = jax.random.randint(ikey, (B,), 0, n_items, dtype=jnp.int32)
    brand = jax.random.randint(bkey, (B,), 0, n_brands, dtype=jnp.int32)
    category = jax.random.randint(ckey, (B,), 0, n_categories, dtype=jnp.int32)
    price = jax.random.uniform(prkey, (B,), jnp.float32, 0.0, 100.0)

    out = recommender_forward(params, user, item, brand, category, price)
    out = jax.block_until_ready(out)
    assert out.shape == (B,), out.shape

    # Apples-to-apples: same bf16 rounding of embeddings / W1, f32 accumulation.
    ref_match = reference_forward(params, user, item, brand, category, price,
                                  match_kernel_rounding=True)
    assert jnp.allclose(out, ref_match, atol=2e-3, rtol=2e-3), (out, ref_match)

    # Sanity vs. full-f32-weight reference (tolerance widened for bf16 W1 storage).
    ref_f32 = reference_forward(params, user, item, brand, category, price,
                                match_kernel_rounding=False)
    assert jnp.allclose(out, ref_f32, atol=3e-1, rtol=5e-2), (out, ref_f32)

    print("KERNEL_OK")
</pallas_src>

<mosaic_0001>
module attributes {stable_mosaic.version = 11 : i64} {
  func.func @_mlp_kernel(%arg0: i32, %arg1: memref<128x50xbf16, #tpu.memory_space<vmem>>, %arg2: memref<128x50xbf16, #tpu.memory_space<vmem>>, %arg3: memref<128x25xbf16, #tpu.memory_space<vmem>>, %arg4: memref<128x25xbf16, #tpu.memory_space<vmem>>, %arg5: memref<128x1xf32, #tpu.memory_space<vmem>>, %arg6: memref<50x128xbf16, #tpu.memory_space<vmem>>, %arg7: memref<50x128xbf16, #tpu.memory_space<vmem>>, %arg8: memref<25x128xbf16, #tpu.memory_space<vmem>>, %arg9: memref<25x128xbf16, #tpu.memory_space<vmem>>, %arg10: memref<1x128xf32, #tpu.memory_space<vmem>>, %arg11: memref<1x128xf32, #tpu.memory_space<vmem>>, %arg12: memref<1x128xf32, #tpu.memory_space<vmem>>, %arg13: memref<1x1xf32, #tpu.memory_space<smem>>, %arg14: memref<1x128xf32, #tpu.memory_space<vmem>>) attributes {dimension_semantics = [#tpu.dimension_semantics<parallel>], iteration_bounds = array<i64: 1>, scalar_prefetch = 0 : i64, scratch_operands = 0 : i64, tpu.core_type = #tpu.core_type<tc>, window_params = [{transform_indices = @transform_0, window_bounds = array<i64: 128, 50>}, {transform_indices = @transform_1, window_bounds = array<i64: 128, 50>}, {transform_indices = @transform_2, window_bounds = array<i64: 128, 25>}, {transform_indices = @transform_3, window_bounds = array<i64: 128, 25>}, {transform_indices = @transform_4, window_bounds = array<i64: 128, 1>}, {pipeline_mode = #tpu.pipeline_mode<synchronous>, transform_indices = @transform_5, window_bounds = array<i64: 50, 128>}, {pipeline_mode = #tpu.pipeline_mode<synchronous>, transform_indices = @transform_6, window_bounds = array<i64: 50, 128>}, {pipeline_mode = #tpu.pipeline_mode<synchronous>, transform_indices = @transform_7, window_bounds = array<i64: 25, 128>}, {pipeline_mode = #tpu.pipeline_mode<synchronous>, transform_indices = @transform_8, window_bounds = array<i64: 25, 128>}, {pipeline_mode = #tpu.pipeline_mode<synchronous>, transform_indices = @transform_9, window_bounds = array<i64: 1, 128>}, {pipeline_mode = #tpu.pipeline_mode<synchronous>, transform_indices = @transform_10, window_bounds = array<i64: 1, 128>}, {pipeline_mode = #tpu.pipeline_mode<synchronous>, transform_indices = @transform_11, window_bounds = array<i64: 1, 128>}, {transform_indices = @transform_12, window_bounds = array<i64: 1, 1>}, {transform_indices = @transform_13, window_bounds = array<i64: 1, 128>}]} {
    %c0 = arith.constant 0 : index
    %c0_0 = arith.constant 0 : index
    %0 = vector.load %arg1[%c0, %c0_0] : memref<128x50xbf16, #tpu.memory_space<vmem>>, vector<128x50xbf16>
    %c0_1 = arith.constant 0 : index
    %c0_2 = arith.constant 0 : index
    %1 = vector.load %arg6[%c0_1, %c0_2] : memref<50x128xbf16, #tpu.memory_space<vmem>>, vector<50x128xbf16>
    %cst = arith.constant dense<0.000000e+00> : vector<128x128xf32>
    %2 = tpu.matmul %0, %1, %cst {dimension_numbers = #tpu.dot_dimension_numbers<[1], [0], [0], [1], [0, 0, 1, 1], [], []>} : vector<128x50xbf16>, vector<50x128xbf16>, vector<128x128xf32> -> vector<128x128xf32>
    %c0_3 = arith.constant 0 : index
    %c0_4 = arith.constant 0 : index
    %3 = vector.load %arg2[%c0_3, %c0_4] : memref<128x50xbf16, #tpu.memory_space<vmem>>, vector<128x50xbf16>
    %c0_5 = arith.constant 0 : index
    %c0_6 = arith.constant 0 : index
    %4 = vector.load %arg7[%c0_5, %c0_6] : memref<50x128xbf16, #tpu.memory_space<vmem>>, vector<50x128xbf16>
    %cst_7 = arith.constant dense<0.000000e+00> : vector<128x128xf32>
    %5 = tpu.matmul %3, %4, %cst_7 {dimension_numbers = #tpu.dot_dimension_numbers<[1], [0], [0], [1], [0, 0, 1, 1], [], []>} : vector<128x50xbf16>, vector<50x128xbf16>, vector<128x128xf32> -> vector<128x128xf32>
    %6 = arith.addf %2, %5 : vector<128x128xf32>
    %c0_8 = arith.constant 0 : index
    %c0_9 = arith.constant 0 : index
    %7 = vector.load %arg3[%c0_8, %c0_9] : memref<128x25xbf16, #tpu.memory_space<vmem>>, vector<128x25xbf16>
    %c0_10 = arith.constant 0 : index
    %c0_11 = arith.constant 0 : index
    %8 = vector.load %arg8[%c0_10, %c0_11] : memref<25x128xbf16, #tpu.memory_space<vmem>>, vector<25x128xbf16>
    %cst_12 = arith.constant dense<0.000000e+00> : vector<128x128xf32>
    %9 = tpu.matmul %7, %8, %cst_12 {dimension_numbers = #tpu.dot_dimension_numbers<[1], [0], [0], [1], [0, 0, 1, 1], [], []>} : vector<128x25xbf16>, vector<25x128xbf16>, vector<128x128xf32> -> vector<128x128xf32>
    %10 = arith.addf %6, %9 : vector<128x128xf32>
    %c0_13 = arith.constant 0 : index
    %c0_14 = arith.constant 0 : index
    %11 = vector.load %arg4[%c0_13, %c0_14] : memref<128x25xbf16, #tpu.memory_space<vmem>>, vector<128x25xbf16>
    %c0_15 = arith.constant 0 : index
    %c0_16 = arith.constant 0 : index
    %12 = vector.load %arg9[%c0_15, %c0_16] : memref<25x128xbf16, #tpu.memory_space<vmem>>, vector<25x128xbf16>
    %cst_17 = arith.constant dense<0.000000e+00> : vector<128x128xf32>
    %13 = tpu.matmul %11, %12, %cst_17 {dimension_numbers = #tpu.dot_dimension_numbers<[1], [0], [0], [1], [0, 0, 1, 1], [], []>} : vector<128x25xbf16>, vector<25x128xbf16>, vector<128x128xf32> -> vector<128x128xf32>
    %14 = arith.addf %10, %13 : vector<128x128xf32>
    %c0_18 = arith.constant 0 : index
    %c0_19 = arith.constant 0 : index
    %15 = vector.load %arg5[%c0_18, %c0_19] : memref<128x1xf32, #tpu.memory_space<vmem>>, vector<128x1xf32>
    %c0_20 = arith.constant 0 : index
    %c0_21 = arith.constant 0 : index
    %16 = vector.load %arg10[%c0_20, %c0_21] : memref<1x128xf32, #tpu.memory_space<vmem>>, vector<1x128xf32>
    %17 = vector.broadcast %15 : vector<128x1xf32> to vector<128x128xf32>
    %18 = vector.broadcast %16 : vector<1x128xf32> to vector<128x128xf32>
    %19 = arith.mulf %17, %18 : vector<128x128xf32>
    %20 = arith.addf %14, %19 : vector<128x128xf32>
    %c0_22 = arith.constant 0 : index
    %c0_23 = arith.constant 0 : index
    %21 = vector.load %arg11[%c0_22, %c0_23] : memref<1x128xf32, #tpu.memory_space<vmem>>, vector<1x128xf32>
    %22 = vector.broadcast %21 : vector<1x128xf32> to vector<128x128xf32>
    %23 = arith.addf %20, %22 : vector<128x128xf32>
    %cst_24 = arith.constant 0.000000e+00 : f32
    %24 = vector.broadcast %cst_24 : f32 to vector<128x128xf32>
    %25 = arith.maximumf %23, %24 : vector<128x128xf32>
    %26 = vector.shape_cast %25 : vector<128x128xf32> to vector<1x128x128xf32>
    %c0_25 = arith.constant 0 : index
    %c0_26 = arith.constant 0 : index
    %27 = vector.load %arg12[%c0_25, %c0_26] : memref<1x128xf32, #tpu.memory_space<vmem>>, vector<1x128xf32>
    %28 = vector.shape_cast %27 : vector<1x128xf32> to vector<1x1x128xf32>
    %29 = vector.broadcast %28 : vector<1x1x128xf32> to vector<1x128x128xf32>
    %30 = arith.mulf %26, %29 : vector<1x128x128xf32>
    %cst_27 = arith.constant dense<0.000000e+00> : vector<1x128xf32>
    %31 = vector.multi_reduction <add>, %30, %cst_27 [2] : vector<1x128x128xf32> to vector<1x128xf32>
    %c0_28 = arith.constant 0 : index
    %c0_29 = arith.constant 0 : index
    %32 = memref.load %arg13[%c0_28, %c0_29] : memref<1x1xf32, #tpu.memory_space<smem>>
    %33 = vector.broadcast %32 : f32 to vector<1x128xf32>
    %34 = arith.addf %31, %33 : vector<1x128xf32>
    %c0_30 = arith.constant 0 : index
    %c0_31 = arith.constant 0 : index
    %35 = vector.load %arg14[%c0_30, %c0_31] : memref<1x128xf32, #tpu.memory_space<vmem>>, vector<1x128xf32>
    tpu.vector_store %arg14[%c0_30, %c0_31], %34 {strides = array<i32>} : memref<1x128xf32, #tpu.memory_space<vmem>>, vector<1x128xf32>,
    return
  }
  func.func @transform_0(%arg0: i32) -> (i32, i32) {
    %c0_i32 = arith.constant 0 : i32
    %c0_i32_0 = arith.constant 0 : i32
    return %arg0, %c0_i32 : i32, i32
  }
  func.func @transform_1(%arg0: i32) -> (i32, i32) {
    %c0_i32 = arith.constant 0 : i32
    %c0_i32_0 = arith.constant 0 : i32
    return %arg0, %c0_i32 : i32, i32
  }
  func.func @transform_2(%arg0: i32) -> (i32, i32) {
    %c0_i32 = arith.constant 0 : i32
    %c0_i32_0 = arith.constant 0 : i32
    return %arg0, %c0_i32 : i32, i32
  }
  func.func @transform_3(%arg0: i32) -> (i32, i32) {
    %c0_i32 = arith.constant 0 : i32
    %c0_i32_0 = arith.constant 0 : i32
    return %arg0, %c0_i32 : i32, i32
  }
  func.func @transform_4(%arg0: i32) -> (i32, i32) {
    %c0_i32 = arith.constant 0 : i32
    %c0_i32_0 = arith.constant 0 : i32
    return %arg0, %c0_i32 : i32, i32
  }
  func.func @transform_5(%arg0: i32) -> (i32, i32) {
    %c0_i32 = arith.constant 0 : i32
    %c0_i32_0 = arith.constant 0 : i32
    %c0_i32_1 = arith.constant 0 : i32
    return %c0_i32, %c0_i32_0 : i32, i32
  }
  func.func @transform_6(%arg0: i32) -> (i32, i32) {
    %c0_i32 = arith.constant 0 : i32
    %c0_i32_0 = arith.constant 0 : i32
    %c0_i32_1 = arith.constant 0 : i32
    return %c0_i32, %c0_i32_0 : i32, i32
  }
  func.func @transform_7(%arg0: i32) -> (i32, i32) {
    %c0_i32 = arith.constant 0 : i32
    %c0_i32_0 = arith.constant 0 : i32
    %c0_i32_1 = arith.constant 0 : i32
    return %c0_i32, %c0_i32_0 : i32, i32
  }
  func.func @transform_8(%arg0: i32) -> (i32, i32) {
    %c0_i32 = arith.constant 0 : i32
    %c0_i32_0 = arith.constant 0 : i32
    %c0_i32_1 = arith.constant 0 : i32
    return %c0_i32, %c0_i32_0 : i32, i32
  }
  func.func @transform_9(%arg0: i32) -> (i32, i32) {
    %c0_i32 = arith.constant 0 : i32
    %c0_i32_0 = arith.constant 0 : i32
    %c0_i32_1 = arith.constant 0 : i32
    return %c0_i32, %c0_i32_0 : i32, i32
  }
  func.func @transform_10(%arg0: i32) -> (i32, i32) {
    %c0_i32 = arith.constant 0 : i32
    %c0_i32_0 = arith.constant 0 : i32
    %c0_i32_1 = arith.constant 0 : i32
    return %c0_i32, %c0_i32_0 : i32, i32
  }
  func.func @transform_11(%arg0: i32) -> (i32, i32) {
    %c0_i32 = arith.constant 0 : i32
    %c0_i32_0 = arith.constant 0 : i32
    %c0_i32_1 = arith.constant 0 : i32
    return %c0_i32, %c0_i32_0 : i32, i32
  }
  func.func @transform_12(%arg0: i32) -> (i32, i32) {
    %c0_i32 = arith.constant 0 : i32
    %c0_i32_0 = arith.constant 0 : i32
    %c0_i32_1 = arith.constant 0 : i32
    return %c0_i32, %c0_i32_0 : i32, i32
  }
  func.func @transform_13(%arg0: i32) -> (i32, i32) {
    %c0_i32 = arith.constant 0 : i32
    %c0_i32_0 = arith.constant 0 : i32
    return %arg0, %c0_i32 : i32, i32
  }
}

</mosaic_0001>

<bundles_post_ra>
// kernel: tpu_custom_call.1
= control target key start
LH: loop header
LB: loop body
LE: loop exit
PB: predicated region body
PF: predicated region fallthrough
CT: control target
= control target key end

     0   :  { %vm179_vm0 = vcmask 1040384   ;;  %vm154_vm1 = vcmask 408576   ;;  %vm561_vm2 = vcmask 1043456   ;;  %vm562_vm3 = vcmask 1044480   ;;  %s2046_s0 = inlined_call_operand.vmem [shape: bf16[128,50], index: 0, kind: input, shape index: {}]   ;;  %s2047_s1 = inlined_call_operand.vmem [shape: bf16[128,50], index: 1, kind: input, shape index: {}]   ;;  %s2048_s2 = inlined_call_operand.vmem [shape: bf16[128,25], index: 2, kind: input, shape index: {}]   ;;  %s2049_s3 = inlined_call_operand.vmem [shape: bf16[128,25], index: 3, kind: input, shape index: {}]   ;;  %s2050_s4 = inlined_call_operand.vmem [shape: f32[128,1], index: 4, kind: input, shape index: {}]   ;;  %s2051_s5 = inlined_call_operand.vmem [shape: bf16[50,128], index: 5, kind: input, shape index: {}]   ;;  %s2052_s6 = inlined_call_operand.vmem [shape: bf16[50,128], index: 6, kind: input, shape index: {}]   ;;  %s2053_s7 = inlined_call_operand.vmem [shape: bf16[25,128], index: 7, kind: input, shape index: {}]   ;;  %s2054_s8 = inlined_call_operand.vmem [shape: bf16[25,128], index: 8, kind: input, shape index: {}]   ;;  %s2055_s9 = inlined_call_operand.vmem [shape: f32[1,128], index: 9, kind: input, shape index: {}]   ;;  %s2056_s10 = inlined_call_operand.vmem [shape: f32[1,128], index: 10, kind: input, shape index: {}]   ;;  %s2057_s11 = inlined_call_operand.vmem [shape: f32[1,128], index: 11, kind: input, shape index: {}]   ;;  %s2058_s12 = inlined_call_operand.<no memory space> [shape: f32[1,1], index: 12, kind: input, shape index: {}]   ;;  %s2059_s13 = inlined_call_operand.hbm [shape: f32[1,128], index: 13, kind: output, shape index: {}]  }
   0x1   :  { %v1500_v0 = vld [vmem:[%s2052_s6 + $0x18] ss:$0 sps:$4 sm:$0x11]   ;;  %v1502_v2 = vld [vmem:[%s2052_s6 + $0x10] sm:$0xff]   ;;  %v1504_v6 = vld [vmem:[%s2052_s6 + $0x8] sm:$0xff]   ;;  %v1566_v12 = vmov 65535  }
   0x2   :  { %v1501_v1 = vld [vmem:[%s2051_s5 + $0x18] ss:$0 sps:$4 sm:$0x11]   ;;  %1493 = vmatprep.subr.msk.bf16.mxu0 %vm179_vm0, %v1500_v0  ;;  %v181_v3 = vsel %vm179_vm0, %v1500_v0, 0  ;;  %v1503_v4 = vld [vmem:[%s2051_s5 + $0x10] sm:$0xff]   ;;  %v1505_v7 = vld [vmem:[%s2051_s5 + $0x8] sm:$0xff]  }
   0x3   :  { %1494 = vmatprep.subr.msk.bf16.mxu1 %vm179_vm0, %v1501_v1  ;;  %1406 = vmatpush3.bf16.msra.mxu0 %v181_v3  ;;  %v366_v5 = vsel %vm179_vm0, %v1501_v1, 0  ;;  %v1506_v8 = vld [vmem:[%s2052_s6] sm:$0xff]   ;;  %v563_v13 = vsel %vm561_vm2, 4294967295, %v1566_v12  ;;  %v1512_v15 = vld [vmem:[%s2053_s7 + $0x8] sm:$0x1f]   ;;  %v1567_v21 = vmov 0  }
   0x4   :  { %1430 = vmatpush3.bf16.msra.mxu1 %v366_v5  ;;  %1407 = vmatprep.subr.bf16.mxu0 %v1502_v2  ;;  %v1507_v9 = vld [vmem:[%s2051_s5] sm:$0xff]   ;;  %v564_v14 = vsel %vm562_vm3, %v563_v13, 0  ;;  %v1513_v16 = vld [vmem:[%s2054_s8 + $0x8] sm:$0x1f]   ;;  %v1514_v22 = vld [vmem:[%s2047_s1 + $0x10] sm:$0xff]   ;;  %vm536_vm4 = vcmask 203776  }
   0x5   :  { %1431 = vmatprep.subr.bf16.mxu1 %v1503_v4  ;;  %v1508_v10 = vld [vmem:[%s2047_s1] sm:$0xff]   ;;  %v1510_v17 = vld [vmem:[%s2047_s1 + $0x8] sm:$0xff]   ;;  %v566_v18 = vand.u32 %v1512_v15, %v564_v14  ;;  %v777_v20 = vand.u32 %v1513_v16, %v564_v14  ;;  %1498 = vset.pattern.permute.xlu0 %v1567_v21  ;;  %v1515_v23 = vld [vmem:[%s2046_s0 + $0x10] sm:$0xff]  }
   0x6   :  { %v1509_v11 = vld [vmem:[%s2046_s0] sm:$0xff]   ;;  %1413 = vmatprep.mubr.msk.bf16.mxu0 %vm154_vm1, %v1508_v10  ;;  %v1511_v19 = vld [vmem:[%s2046_s0 + $0x8] sm:$0xff]   ;;  %1499 = vset.pattern.permute.xlu1 %v1567_v21  ;;  %v1516_v24 = vld [vmem:[%s2047_s1 + $0x18] sm:$0xff]  }
   0x7   :  { %1408 = vmatpush3.bf16.msra.mxu0 %v1502_v2  ;;  %1437 = vmatprep.mubr.msk.bf16.mxu1 %vm154_vm1, %v1509_v11  ;;  %v1517_v25 = vld [vmem:[%s2046_s0 + $0x18] sm:$0xff]   ;;  %v1518_v26 = vld [vmem:[%s2047_s1 + $0x20] sm:$0xff]   ;;  %v1520_v30 = vld [vmem:[%s2047_s1 + $0x28] sm:$0xff]  }
   0x8   :  { %1432 = vmatpush3.bf16.msra.mxu1 %v1503_v4  ;;  %1409 = vmatprep.subr.bf16.mxu0 %v1504_v6  ;;  %v1522_v27 = vld [vmem:[%s2053_s7] sm:$0xff]   ;;  %v1521_v31 = vld [vmem:[%s2046_s0 + $0x28] sm:$0xff]   ;;  %v1524_v32 = vld [vmem:[%s2047_s1 + $0x30] sm:$0xff]  }
   0x9   :  { %1433 = vmatprep.subr.bf16.mxu1 %v1505_v7  ;;  %v1523_v28 = vld [vmem:[%s2054_s8] sm:$0xff]   ;;  %v1525_v33 = vld [vmem:[%s2046_s0 + $0x30] sm:$0xff]   ;;  %v1526_v34 = vld [vmem:[%s2047_s1 + $0x38] sm:$0xff]  }
   0xa   :  { %v1519_v29 = vld [vmem:[%s2046_s0 + $0x20] sm:$0xff]   ;;  %v1527_v35 = vld [vmem:[%s2046_s0 + $0x38] sm:$0xff]   ;;  %v894_v39 = vld [vmem:[%s2050_s4 + $0x10] sm:$0xff] }
   0xb   :  { %1410 = vmatpush3.bf16.msra.mxu0 %v1504_v6  ;;  %v1528_v36 = vld [vmem:[%s2048_s2] sm:$0xff]   ;;  %921 = vperm.xlu1 %1499, %v894_v39   ;;  %v893_v40 = vld [vmem:[%s2050_s4 + $0x8] sm:$0xff]  ;;  %v895_v42 = vld [vmem:[%s2050_s4 + $0x18] sm:$0xff] }
   0xc   :  { %1434 = vmatpush3.bf16.msra.mxu1 %v1505_v7  ;;  %1411 = vmatprep.subr.bf16.mxu0 %v1506_v8  ;;  %v1529_v37 = vld [vmem:[%s2049_s3] sm:$0xff]   ;;  %v1530_v41 = vld [vmem:[%s2048_s2 + $0x8] sm:$0xff]   ;;  %v1532_v44 = vld [vmem:[%s2048_s2 + $0x10] sm:$0xff]  }
   0xd   :  { %1435 = vmatprep.subr.bf16.mxu1 %v1507_v9  ;;  %v892_v38 = vld [vmem:[%s2050_s4] sm:$0xff]  ;;  %v1531_v43 = vld [vmem:[%s2049_s3 + $0x8] sm:$0xff]   ;;  %v1533_v45 = vld [vmem:[%s2049_s3 + $0x10] sm:$0xff]  }
   0xe   :  { %911 = vperm.xlu0 %1498, %v892_v38   ;;  %v896_v46 = vld [vmem:[%s2050_s4 + $0x20] sm:$0xff] }
   0xf   :  { %1412 = vmatpush3.bf16.msra.mxu0 %v1506_v8  ;;  %926 = vperm.xlu1 %1499, %v895_v42  }
  0x10   :  { %1436 = vmatpush3.bf16.msra.mxu1 %v1507_v9  ;;  %1453 = vmatprep.subr.bf16.mxu0 %v566_v18 }
  0x11   :  { %1473 = vmatprep.subr.bf16.mxu1 %v777_v20 }
  0x12   :  { %1414 = vmatmul.mubr.msk.bf16.vlgmr.msra.gmra.mxu0 %vm154_vm1, %v1510_v17  ;;  %916 = vperm.xlu0 %1498, %v893_v40  }
  0x13   :  { %1438 = vmatmul.mubr.msk.bf16.vlgmr.msra.gmra.mxu1 %vm154_vm1, %v1511_v19  ;;  %1454 = vmatpush3.bf16.msra.mxu0 %v566_v18 }
  0x14   :  { %1474 = vmatpush3.bf16.msra.mxu1 %v777_v20  ;;  %1417 = vmatprep.mubr.msk.bf16.mxu0 %vm154_vm1, %v1514_v22 }
  0x15   :  { %1441 = vmatprep.mubr.msk.bf16.mxu1 %vm154_vm1, %v1515_v23  ;;  %1455 = vmatprep.subr.bf16.mxu0 %v1522_v27 }
  0x16   :  { %1475 = vmatprep.subr.bf16.mxu1 %v1523_v28 }
  0x17   :  { %1456 = vmatpush3.bf16.msra.mxu0 %v1522_v27 }
  0x18   :  { %1476 = vmatpush3.bf16.msra.mxu1 %v1523_v28 }
  0x1a   :  { %1418 = vmatmul.mubr.msk.bf16.gmra.mxu0 %vm154_vm1, %v1516_v24 }
  0x1b   :  { %1442 = vmatmul.mubr.msk.bf16.gmra.mxu1 %vm154_vm1, %v1517_v25  ;;  %1421 = vmatprep.mubr.msk.bf16.mxu0 %vm154_vm1, %v1518_v26 }
  0x1c   :  { %1445 = vmatprep.mubr.msk.bf16.mxu1 %vm154_vm1, %v1519_v29 }
  0x22   :  { %1422 = vmatmul.mubr.msk.bf16.gmra.mxu0 %vm154_vm1, %v1520_v30 }
  0x23   :  { %1446 = vmatmul.mubr.msk.bf16.gmra.mxu1 %vm154_vm1, %v1521_v31  ;;  %1425 = vmatprep.mubr.msk.bf16.mxu0 %vm154_vm1, %v1524_v32 }
  0x24   :  { %1449 = vmatprep.mubr.msk.bf16.mxu1 %vm154_vm1, %v1525_v33 }
  0x2a   :  { %1426 = vmatmul.mubr.msk.bf16.gmra.mxu0 %vm154_vm1, %v1526_v34 }
  0x2b   :  { %1450 = vmatmul.mubr.msk.bf16.gmra.mxu1 %vm154_vm1, %v1527_v35  ;;  %1457 = vmatprep.mubr.msk.bf16.mxu0 %vm536_vm4, %v1528_v36 }
  0x2c   :  { %1477 = vmatprep.mubr.msk.bf16.mxu1 %vm536_vm4, %v1529_v37 }
  0x2d   :  { %19 = vsyncpa [#allocation4], 0  ;;  %v897_v47 = vld [vmem:[%s2050_s4 + $0x28] sm:$0xff]  ;;  %931 = vperm.xlu0 %1498, %v896_v46   ;;  %v898_v48 = vld [vmem:[%s2050_s4 + $0x30] sm:$0xff]  ;;  %vm1166_vm5 = vcmask 130112   ;;  %vm1173_vm6 = vcmask 195712  }
  0x2e   :  { %936 = vperm.xlu1 %1499, %v897_v47   ;;  %v1534_v49 = vld [vmem:[%s2048_s2 + $0x18] sm:$0xff]   ;;  %v1536_v52 = vld [vmem:[%s2048_s2 + $0x20] sm:$0xff]   ;;  %v901_v55 = vld [vmem:[%s2050_s4 + $0x48] sm:$0xff]  ;;  %vm1180_vm7 = vcmask 261312   ;;  %vm1187_vm8 = vcmask 326912   ;;  %vm1194_vm9 = vcmask 392512  }
  0x2f   :  { %v899_v50 = vld [vmem:[%s2050_s4 + $0x38] sm:$0xff]  ;;  %v1537_v53 = vld [vmem:[%s2049_s3 + $0x20] sm:$0xff]   ;;  %v902_v56 = vld [vmem:[%s2050_s4 + $0x50] sm:$0xff]  ;;  %vm1201_vm10 = vcmask 458112   ;;  %vm1208_vm11 = vcmask 523712   ;;  %vm1215_vm12 = vcmask 589312  }
  0x30   :  { %v1535_v51 = vld [vmem:[%s2049_s3 + $0x18] sm:$0xff]   ;;  %v900_v54 = vld [vmem:[%s2050_s4 + $0x40] sm:$0xff]  ;;  %v1538_v57 = vld [vmem:[%s2048_s2 + $0x28] sm:$0xff]   ;;  %vm1222_vm13 = vcmask 654912   ;;  %vm1229_vm14 = vcmask 720512   ;;  %vm1236_vm15 = vcmask 786112  }
  0x31   :  { %941 = vperm.xlu0 %1498, %v898_v48   ;;  %v903_v58 = vld [vmem:[%s2050_s4 + $0x58] sm:$0xff]  ;;  %v1539_v59 = vld [vmem:[%s2049_s3 + $0x28] sm:$0xff]   ;;  %v1540_v60 = vld [vmem:[%s2048_s2 + $0x30] sm:$0xff]   ;;  %vm1243_vm0 = vcmask 851712   ;;  %vm1250_vm1 = vcmask 917312   ;;  %vm1257_vm2 = vcmask 982912  }
  0x32   :  { %1458 = vmatmul.mubr.msk.bf16.vlgmr.msra.gmra.mxu0 %vm536_vm4, %v1530_v41  ;;  %946 = vperm.xlu1 %1499, %v899_v50   ;;  %v1541_v61 = vld [vmem:[%s2049_s3 + $0x30] sm:$0xff]   ;;  %v904_v62 = vld [vmem:[%s2050_s4 + $0x60] sm:$0xff]  ;;  %v905_v63 = vld [vmem:[%s2050_s4 + $0x68] sm:$0xff]  ;;  %vm1264_vm3 = vcmask 1048512  }
  0x33   :  { %1478 = vmatmul.mubr.msk.bf16.vlgmr.msra.gmra.mxu1 %vm536_vm4, %v1531_v43  ;;  %1461 = vmatprep.mubr.msk.bf16.mxu0 %vm536_vm4, %v1532_v44  ;;  %v906_v0 = vld [vmem:[%s2050_s4 + $0x70] sm:$0xff]  ;;  %v1542_v1 = vld [vmem:[%s2048_s2 + $0x38] sm:$0xff]   ;;  %v1892_v40 = vld [vmem:[%s2055_s9] ss:$0 sm:$0xff] }
  0x34   :  { %1481 = vmatprep.mubr.msk.bf16.mxu1 %vm536_vm4, %v1533_v45  ;;  %v907_v2 = vld [vmem:[%s2050_s4 + $0x78] sm:$0xff] }
  0x35   :  { %951 = vperm.xlu0 %1498, %v900_v54   ;;  %v1543_v3 = vld [vmem:[%s2049_s3 + $0x38] sm:$0xff]  }
  0x36   :  { %956 = vperm.xlu1 %1499, %v901_v55  }
  0x39   :  { %961 = vperm.xlu0 %1498, %v902_v56  }
  0x3a   :  { %1462 = vmatmul.mubr.msk.bf16.gmra.mxu0 %vm536_vm4, %v1534_v49  ;;  %966 = vperm.xlu1 %1499, %v903_v58   ;;  %v1903_v58 = vld [vmem:[%s2056_s10] ss:$0 sm:$0xff] }
  0x3b   :  { %1482 = vmatmul.mubr.msk.bf16.gmra.mxu1 %vm536_vm4, %v1535_v51  ;;  %1465 = vmatprep.mubr.msk.bf16.mxu0 %vm536_vm4, %v1536_v52 }
  0x3c   :  { %1485 = vmatprep.mubr.msk.bf16.mxu1 %vm536_vm4, %v1537_v53 }
  0x3d   :  { %971 = vperm.xlu0 %1498, %v904_v62  }
  0x3e   :  { %976 = vperm.xlu1 %1499, %v905_v63  }
  0x41   :  { %981 = vperm.xlu0 %1498, %v906_v0  }
  0x42   :  { %1466 = vmatmul.mubr.msk.bf16.gmra.mxu0 %vm536_vm4, %v1538_v57  ;;  %986 = vperm.xlu1 %1499, %v907_v2  }
  0x43   :  { %1486 = vmatmul.mubr.msk.bf16.gmra.mxu1 %vm536_vm4, %v1539_v59  ;;  %1469 = vmatprep.mubr.msk.bf16.mxu0 %vm536_vm4, %v1540_v60 }
  0x44   :  { %1489 = vmatprep.mubr.msk.bf16.mxu1 %vm536_vm4, %v1541_v61 }
  0x4a   :  { %1470 = vmatmul.mubr.msk.bf16.gmra.mxu0 %vm536_vm4, %v1542_v1 }
  0x4b   :  { %1490 = vmatmul.mubr.msk.bf16.gmra.mxu1 %vm536_vm4, %v1543_v3 }
  0x86   :  { %v922_v22 = vpop.permute.xlu1 %921 }
  0x87   :  { %v997_v47 = vmul.f32 %v1892_v40, %v922_v22 }
  0x89   :  { %v912_v17 = vpop.permute.xlu0 %911 }
  0x8a   :  { %v927_v30 = vpop.permute.xlu1 %926  ;;  %v995_v52 = vmul.f32 %v1892_v40, %v912_v17 }
  0x8b   :  { %v998_v2 = vmul.f32 %v1892_v40, %v927_v30 }
  0x8d   :  { %v917_v25 = vpop.permute.xlu0 %916 }
  0x8e   :  { %v996_v17 = vmul.f32 %v1892_v40, %v917_v25 }
  0xa8   :  { %v932_v33 = vpop.permute.xlu0 %931 }
  0xa9   :  { %v1885_v38 = vpop.permute.xlu1 %936 }
  0xac   :  { %v942_v43 = vpop.permute.xlu0 %941 }
  0xad   :  { %v947_v53 = vpop.permute.xlu1 %946 }
  0xb0   :  { %v1905_v60 = vpop.permute.xlu0 %951 }
  0xb1   :  { %v1915_v22 = vpop.permute.xlu1 %956 }
  0xd2   :  { %v1415_v4 = vpop.f32.mrf.mxu0 }
  0xd3   :  { %v1439_v5 = vpop.f32.mrf.mxu1 }
  0xd4   :  { %v217_v6 = vpop.f32.mrf.mxu0  ;;  %v411_v42 = vadd.f32 %v1439_v5, %v1415_v4 }
  0xd5   :  { %v402_v7 = vpop.f32.mrf.mxu1 }
  0xd6   :  { %v1416_v8 = vpop.f32.mrf.mxu0  ;;  %v403_v46 = vadd.f32 %v402_v7, %v217_v6 }
  0xd7   :  { %v1440_v9 = vpop.f32.mrf.mxu1 }
  0xd8   :  { %v220_v10 = vpop.f32.mrf.mxu0  ;;  %v414_v51 = vadd.f32 %v1440_v9, %v1416_v8 }
  0xd9   :  { %v405_v11 = vpop.f32.mrf.mxu1 }
  0xda   :  { %v1419_v12 = vpop.f32.mrf.mxu0  ;;  %v406_v59 = vadd.f32 %v405_v11, %v220_v10  ;;  %v1913_v11 = vld [vmem:[%s2057_s11] ss:$0 sm:$0xff] }
  0xdb   :  { %v1443_v13 = vpop.f32.mrf.mxu1 }
  0xdc   :  { %v233_v14 = vpop.f32.mrf.mxu0  ;;  %v427_v1 = vadd.f32 %v1443_v13, %v1419_v12 }
  0xdd   :  { %v418_v15 = vpop.f32.mrf.mxu1 }
  0xde   :  { %v1851_v16 = vpop.f32.mrf.mxu0  ;;  %v419_v9 = vadd.f32 %v418_v15, %v233_v14  ;;  %v1001_v14 = vmul.f32 %v1892_v40, %v942_v43 }
  0xdf   :  { %v1853_v18 = vpop.f32.mrf.mxu1 }
  0xe0   :  { %v1855_v19 = vpop.f32.mrf.mxu0 }
  0xe1   :  { %v1857_v20 = vpop.f32.mrf.mxu1 }
  0xe2   :  { %v1859_v21 = vpop.f32.mrf.mxu0 }
  0xe3   :  { %v1861_v23 = vpop.f32.mrf.mxu1 }
  0xe4   :  { %v1863_v24 = vpop.f32.mrf.mxu0 }
  0xe5   :  { %v1865_v26 = vpop.f32.mrf.mxu1 }
  0xe6   :  { %v1867_v27 = vpop.f32.mrf.mxu0 }
  0xe7   :  { %v1869_v28 = vpop.f32.mrf.mxu1 }
  0xe8   :  { %v1871_v29 = vpop.f32.mrf.mxu0 }
  0xe9   :  { %v1873_v31 = vpop.f32.mrf.mxu1 }
  0xea   :  { %v1875_v32 = vpop.f32.mrf.mxu0 }
  0xeb   :  { %v1877_v34 = vpop.f32.mrf.mxu1 }
  0xec   :  { %v1879_v35 = vpop.f32.mrf.mxu0 }
  0xed   :  { %v1881_v36 = vpop.f32.mrf.mxu1 }
  0xee   :  { %v1883_v37 = vpop.f32.mrf.mxu0 }
  0xef   :  { %v1887_v39 = vpop.f32.mrf.mxu1 }
  0xf0   :  { %v1894_v41 = vpop.f32.mrf.mxu0 }
  0xf1   :  { %v1896_v44 = vpop.f32.mrf.mxu1 }
  0xf2   :  { %v1459_v45 = vpop.f32.mrf.mxu0 }
  0xf3   :  { %v667_v48 = vadd.f32 %v1459_v45, %v411_v42  ;;  %v1479_v49 = vpop.f32.mrf.mxu1 }
  0xf4   :  { %v602_v50 = vpop.f32.mrf.mxu0 }
  0xf5   :  { %v878_v54 = vadd.f32 %v1479_v49, %v667_v48  ;;  %v665_v55 = vadd.f32 %v602_v50, %v403_v46  ;;  %v813_v56 = vpop.f32.mrf.mxu1  ;;  %v430_v46 = vadd.f32 %v1853_v18, %v1851_v16 }
  0xf6   :  { %v1460_v57 = vpop.f32.mrf.mxu0 }
  0xf7   :  { %v1013_v61 = vadd.f32 %v997_v47, %v878_v54  ;;  %v876_v62 = vadd.f32 %v813_v56, %v665_v55  ;;  %v668_v63 = vadd.f32 %v1460_v57, %v414_v51  ;;  %v1480_v0 = vpop.f32.mrf.mxu1  ;;  %v962_v47 = vpop.permute.xlu0 %961  ;;  %v422_v54 = vadd.f32 %v1857_v20, %v1855_v19 }
  0xf8   :  { %v605_v3 = vpop.f32.mrf.mxu0  ;;  %v999_v55 = vmul.f32 %v1892_v40, %v932_v33  ;;  %v967_v33 = vpop.permute.xlu1 %966 }
  0xf9   :  { %v1011_v4 = vadd.f32 %v995_v52, %v876_v62  ;;  %v879_v5 = vadd.f32 %v1480_v0, %v668_v63  ;;  %v666_v6 = vadd.f32 %v605_v3, %v406_v59  ;;  %v816_v7 = vpop.f32.mrf.mxu1  ;;  %v1036_v8 = vadd.f32 %v1903_v58, %v1013_v61 }
  0xfa   :  { %v1463_v10 = vpop.f32.mrf.mxu0  ;;  %v443_v63 = vadd.f32 %v1861_v23, %v1859_v21  ;;  %v1002_v0 = vmul.f32 %v1892_v40, %v947_v53  ;;  %v1005_v21 = vmul.f32 %v1892_v40, %v962_v47 }
  0xfb   :  { %v1014_v12 = vadd.f32 %v998_v2, %v879_v5  ;;  %v877_v13 = vadd.f32 %v816_v7, %v666_v6  ;;  %v671_v30 = vadd.f32 %v1463_v10, %v427_v1  ;;  %v1483_v42 = vpop.f32.mrf.mxu1  ;;  %v1052_v45 = vmax.f32 %v1036_v8, 0.0 }
  0xfc   :  { %v618_v15 = vpop.f32.mrf.mxu0  ;;  %v1034_v25 = vadd.f32 %v1903_v58, %v1011_v4  ;;  %v1000_v7 = vmul.f32 %v1892_v40, %v1885_v38  ;;  %v435_v8 = vadd.f32 %v1865_v26, %v1863_v24  ;;  %v446_v38 = vadd.f32 %v1869_v28, %v1867_v27 }
  0xfd   :  { %v1012_v48 = vadd.f32 %v996_v17, %v877_v13  ;;  %v882_v49 = vadd.f32 %v1483_v42, %v671_v30  ;;  %v669_v50 = vadd.f32 %v618_v15, %v419_v9  ;;  %v829_v51 = vpop.f32.mrf.mxu1  ;;  %v1075_v52 = vmul.f32 %v1913_v11, %v1052_v45  ;;  %v1937_v9 = vpop.permute.xlu0 %971 }
  0xfe   :  { %v1464_v56 = vpop.f32.mrf.mxu0  ;;  %v1050_v57 = vmax.f32 %v1034_v25, 0.0  ;;  %v1037_v16 = vadd.f32 %v1903_v58, %v1014_v12 }
  0xff   :  { %v1017_v18 = vadd.f32 %v1001_v14, %v882_v49  ;;  %v880_v43 = vadd.f32 %v829_v51, %v669_v50  ;;  %v672_v59 = vadd.f32 %v1464_v56, %v430_v46  ;;  %v1484_v61 = vpop.f32.mrf.mxu1  ;;  %1093 = vadd.xlane.f32.xlu0 %v1075_v52  ;;  %v1035_v62 = vadd.f32 %v1903_v58, %v1012_v48  ;;  %v977_v51 = vpop.permute.xlu1 %976 }
 0x100   :  { %v621_v1 = vpop.f32.mrf.mxu0  ;;  %v1073_v19 = vmul.f32 %v1913_v11, %v1050_v57  ;;  %v1053_v20 = vmax.f32 %v1037_v16, 0.0  ;;  %v438_v48 = vadd.f32 %v1873_v31, %v1871_v29  ;;  %v1003_v49 = vmul.f32 %v1892_v40, %v1905_v60 }
 0x101   :  { %v1015_v2 = vadd.f32 %v999_v55, %v880_v43  ;;  %v883_v3 = vadd.f32 %v1484_v61, %v672_v59  ;;  %v670_v4 = vadd.f32 %v621_v1, %v422_v54  ;;  %v832_v5 = vpop.f32.mrf.mxu1  ;;  %v1051_v6 = vmax.f32 %v1035_v62, 0.0  ;;  %v982_v43 = vpop.permute.xlu0 %981 }
 0x102   :  { %v1467_v23 = vpop.f32.mrf.mxu0  ;;  %v1040_v53 = vadd.f32 %v1903_v58, %v1017_v18  ;;  %v1076_v24 = vmul.f32 %v1913_v11, %v1053_v20  ;;  %v459_v16 = vadd.f32 %v1877_v34, %v1875_v32  ;;  %v1004_v29 = vmul.f32 %v1892_v40, %v1915_v22 }
 0x103   :  { %v1018_v17 = vadd.f32 %v1002_v0, %v883_v3  ;;  %v881_v10 = vadd.f32 %v832_v5, %v670_v4  ;;  %v675_v12 = vadd.f32 %v1467_v23, %v443_v63  ;;  %v1487_v13 = vpop.f32.mrf.mxu1  ;;  %1089 = vadd.xlane.f32.xlu0 %v1073_v19  ;;  %v1074_v30 = vmul.f32 %v1913_v11, %v1051_v6 }
 0x104   :  { %v634_v42 = vpop.f32.mrf.mxu0  ;;  %v1056_v26 = vmax.f32 %v1040_v53, 0.0  ;;  %v1038_v45 = vadd.f32 %v1903_v58, %v1015_v2  ;;  %v1006_v31 = vmul.f32 %v1892_v40, %v967_v33  ;;  %v451_v1 = vadd.f32 %v1881_v36, %v1879_v35 }
 0x105   :  { %v1016_v46 = vadd.f32 %v1000_v7, %v881_v10  ;;  %v886_v14 = vadd.f32 %v1487_v13, %v675_v12  ;;  %v673_v15 = vadd.f32 %v634_v42, %v435_v8  ;;  %v845_v25 = vpop.f32.mrf.mxu1  ;;  %1091 = vadd.xlane.f32.xlu1 %v1074_v30  ;;  %v1041_v47 = vadd.f32 %v1903_v58, %v1018_v17  ;;  %v987_v8 = vpop.permute.xlu1 %986 }
 0x106   :  { %v1468_v27 = vpop.f32.mrf.mxu0  ;;  %v1079_v28 = vmul.f32 %v1913_v11, %v1056_v26  ;;  %v1054_v50 = vmax.f32 %v1038_v45, 0.0  ;;  %v462_v5 = vadd.f32 %v1887_v39, %v1883_v37  ;;  %v1009_v6 = vmul.f32 %v1892_v40, %v982_v43 }
 0x107   :  { %v1021_v52 = vadd.f32 %v1005_v21, %v886_v14  ;;  %v884_v54 = vadd.f32 %v845_v25, %v673_v15  ;;  %v676_v55 = vadd.f32 %v1468_v27, %v446_v38  ;;  %v1488_v56 = vpop.f32.mrf.mxu1  ;;  %1095 = vadd.xlane.f32.xlu0 %v1076_v24  ;;  %v1057_v57 = vmax.f32 %v1041_v47, 0.0 }
 0x108   :  { %v637_v60 = vpop.f32.mrf.mxu0  ;;  %v1039_v18 = vadd.f32 %v1903_v58, %v1016_v46  ;;  %v1077_v34 = vmul.f32 %v1913_v11, %v1054_v50  ;;  %v454_v12 = vadd.f32 %v1896_v44, %v1894_v41  ;;  %v1007_v37 = vmul.f32 %v1892_v40, %v1937_v9 }
 0x109   :  { %v1019_v59 = vadd.f32 %v1003_v49, %v884_v54  ;;  %v887_v61 = vadd.f32 %v1488_v56, %v676_v55  ;;  %v674_v62 = vadd.f32 %v637_v60, %v438_v48  ;;  %v848_v63 = vpop.f32.mrf.mxu1  ;;  %1101 = vadd.xlane.f32.xlu1 %v1079_v28  ;;  %v1080_v0 = vmul.f32 %v1913_v11, %v1057_v57 }
 0x10a   :  { %v1471_v32 = vpop.f32.mrf.mxu0  ;;  %v1055_v22 = vmax.f32 %v1039_v18, 0.0  ;;  %v1044_v19 = vadd.f32 %v1903_v58, %v1021_v52  ;;  %v1010_v46 = vmul.f32 %v1892_v40, %v987_v8  ;;  %v1008_v47 = vmul.f32 %v1892_v40, %v977_v51 }
 0x10b   :  { %v1022_v20 = vadd.f32 %v1006_v31, %v887_v61  ;;  %v885_v33 = vadd.f32 %v848_v63, %v674_v62  ;;  %v679_v2 = vadd.f32 %v1471_v32, %v459_v16  ;;  %v1491_v3 = vpop.f32.mrf.mxu1  ;;  %1103 = vadd.xlane.f32.xlu0 %v1080_v0  ;;  %v1042_v4 = vadd.f32 %v1903_v58, %v1019_v59 }
 0x10c   :  { %v650_v7 = vpop.f32.mrf.mxu0  ;;  %v1078_v35 = vmul.f32 %v1913_v11, %v1055_v22  ;;  %v1060_v36 = vmax.f32 %v1044_v19, 0.0  ;;  %v1155_v61 = vlaneseq }
 0x10d   :  { %v1020_v21 = vadd.f32 %v1004_v29, %v885_v33  ;;  %v890_v23 = vadd.f32 %v1491_v3, %v679_v2  ;;  %v677_v53 = vadd.f32 %v650_v7, %v451_v1  ;;  %v861_v17 = vpop.f32.mrf.mxu1  ;;  %1097 = vadd.xlane.f32.xlu1 %v1077_v34  ;;  %v1045_v10 = vadd.f32 %v1903_v58, %v1022_v20 }
 0x10e   :  { %v1472_v39 = vpop.f32.mrf.mxu0  ;;  %v1083_v13 = vmul.f32 %v1913_v11, %v1060_v36  ;;  %v1058_v30 = vmax.f32 %v1042_v4, 0.0  ;;  %v1986_v62 = vand.u32 127, %v1155_v61  ;;  %v1989_v1 = vshrl.u32 %v1155_v61, 7 }
 0x10f   :  { %v1025_v38 = vadd.f32 %v1009_v6, %v890_v23  ;;  %v888_v42 = vadd.f32 %v861_v17, %v677_v53  ;;  %v680_v24 = vadd.f32 %v1472_v39, %v462_v5  ;;  %v1492_v26 = vpop.f32.mrf.mxu1  ;;  %1099 = vadd.xlane.f32.xlu0 %v1078_v35  ;;  %v1061_v45 = vmax.f32 %v1045_v10, 0.0 }
 0x110   :  { %v653_v14 = vpop.f32.mrf.mxu0  ;;  %v1043_v15 = vadd.f32 %v1903_v58, %v1020_v21  ;;  %v1081_v49 = vmul.f32 %v1913_v11, %v1058_v30  ;;  %v1161_v0 = vadd.s32 4294967288, %v1986_v62  ;;  %v1995_v34 = vstv %s2058_s12  ;;  %s1568_s12 = smov [#allocation3]  }
 0x111   :  { %v1023_v25 = vadd.f32 %v1007_v37, %v888_v42  ;;  %v891_v41 = vadd.f32 %v1492_v26, %v680_v24  ;;  %v678_v44 = vadd.f32 %v653_v14, %v454_v12  ;;  %1109 = vadd.xlane.f32.xlu1 %v1083_v13  ;;  %v1084_v9 = vmul.f32 %v1913_v11, %v1061_v45  ;;  %v864_v48 = vpop.f32.mrf.mxu1  ;;  %s1274_s21 = sshll.u32 %s1568_s12, 4  ;;  %s1275_s21 = int_to_ptr.vmem [resolvable:$true] %s1274_s21 }
 0x112   :  { %v1059_v27 = vmax.f32 %v1043_v15, 0.0  ;;  %v1048_v54 = vadd.f32 %v1903_v58, %v1025_v38  ;;  %v1164_v22 = vsub.s32 %v1161_v0, %v1989_v1  ;;  %v1175_v33 = vadd.s32 4294967272, %v1986_v62  ;;  %s1544_s22 = scalar_lea.vmem %s1275_s21, 16  ;;  %s1548_s23 = scalar_lea.vmem %s1275_s21, 32 }
 0x113   :  { %v1026_v28 = vadd.f32 %v1010_v46, %v891_v41  ;;  %v889_v50 = vadd.f32 %v864_v48, %v678_v44  ;;  %1111 = vadd.xlane.f32.xlu0 %v1084_v9  ;;  %v1046_v52 = vadd.f32 %v1903_v58, %v1023_v25  ;;  %v1182_v7 = vadd.s32 4294967264, %v1986_v62  ;;  %p1545_p0 = scmp.ne.s32.totalorder %s1275_s21, %s1544_s22  ;;  %p1549_p1 = scmp.lt.s32.totalorder %s1275_s21, %s1275_s21 }
 0x114   :  { %v1082_v56 = vmul.f32 %v1913_v11, %v1059_v27  ;;  %v1064_v40 = vmax.f32 %v1048_v54, 0.0  ;;  %v1178_v36 = vsub.s32 %v1175_v33, %v1989_v1  ;;  %v1189_v23 = vadd.s32 4294967256, %v1986_v62  ;;  %p1550_p2 = scmp.lt.s32.totalorder %s1548_s23, %s1544_s22 }
 0x115   :  { %v1024_v55 = vadd.f32 %v1008_v47, %v889_v50  ;;  %1105 = vadd.xlane.f32.xlu1 %v1081_v49  ;;  %v1062_v57 = vmax.f32 %v1046_v52, 0.0  ;;  %v1049_v29 = vadd.f32 %v1903_v58, %v1026_v28  ;;  %v1196_v17 = vadd.s32 4294967248, %v1986_v62 }
 0x116   :  { %v1087_v60 = vmul.f32 %v1913_v11, %v1064_v40  ;;  %v1185_v37 = vsub.s32 %v1182_v7, %v1989_v1  ;;  %v1192_v42 = vsub.s32 %v1189_v23, %v1989_v1  ;;  %v1203_v26 = vadd.s32 4294967240, %v1986_v62  ;;  %p1551_p3 = por %p1550_p2, %p1549_p1 }
 0x117   :  { %1107 = vadd.xlane.f32.xlu0 %v1082_v56  ;;  %v1085_v16 = vmul.f32 %v1913_v11, %v1062_v57  ;;  %v1047_v51 = vadd.f32 %v1903_v58, %v1024_v55  ;;  %v1065_v43 = vmax.f32 %v1049_v29, 0.0  ;;  %v1168_v58 = vadd.s32 4294967280, %v1986_v62 }
 0x118   :  { %v1199_v24 = vsub.s32 %v1196_v17, %v1989_v1  ;;  %v1210_v25 = vadd.s32 4294967232, %v1986_v62  ;;  %v1224_v44 = vadd.s32 4294967216, %v1986_v62  ;;  %v1217_v49 = vadd.s32 4294967224, %v1986_v62  ;;  %p1552_p4 = pnand %p1551_p3, %p1545_p0 }
 0x119   :  { %1113 = vadd.xlane.f32.xlu1 %v1085_v16  ;;  %v1063_v31 = vmax.f32 %v1047_v51, 0.0  ;;  %v1088_v59 = vmul.f32 %v1913_v11, %v1065_v43  ;;  %v1171_v3 = vsub.s32 %v1168_v58, %v1989_v1  ;;  %v1206_v27 = vsub.s32 %v1203_v26, %v1989_v1 }
 0x11a   :  { %v1231_v50 = vadd.s32 4294967208, %v1986_v62  ;;  %v1213_v56 = vsub.s32 %v1210_v25, %v1989_v1  ;;  %v1227_v57 = vsub.s32 %v1224_v44, %v1989_v1  ;;  %v1238_v40 = vadd.s32 4294967200, %v1986_v62 }
 0x11b   :  { %v1086_v18 = vmul.f32 %v1913_v11, %v1063_v31  ;;  %v1159_v11 = vsub.s32 %v1986_v62, %v1989_v1  ;;  %v1220_v31 = vsub.s32 %v1217_v49, %v1989_v1  ;;  %v1245_v58 = vadd.s32 4294967192, %v1986_v62 }
 0x11c   :  { %v1234_v43 = vsub.s32 %v1231_v50, %v1989_v1  ;;  %v1259_v7 = vadd.s32 4294967176, %v1986_v62 }
 0x11d   :  { %1117 = vadd.xlane.f32.xlu1 %v1087_v60  ;;  %1115 = vadd.xlane.f32.xlu0 %v1086_v18 }
 0x121   :  { %1119 = vadd.xlane.f32.xlu0 %v1088_v59 }
 0x188   :  { %v1094_v63 = vpop.xlane.xlu0 %1093 }
 0x189   :  { %v1125_v5 = vadd.f32 %v1995_v34, %v1094_v63 }
 0x18b   :  { %v1172_v12 = vrot.slane %v1125_v5, %v1171_v3 }
 0x18c   :  { %v1090_v32 = vpop.xlane.xlu0 %1089 }
 0x18d   :  { %v1123_v19 = vadd.f32 %v1995_v34, %v1090_v32 }
 0x18e   :  { %v1092_v20 = vpop.xlane.xlu1 %1091 }
 0x18f   :  { %v1124_v2 = vadd.f32 %v1995_v34, %v1092_v20  ;;  %v1160_v35 = vrot.slane %v1123_v19, %v1159_v11  ;;  %v1252_v19 = vadd.s32 4294967184, %v1986_v62 }
 0x190   :  { %v1096_v4 = vpop.xlane.xlu0 %1095 }
 0x191   :  { %v1165_v6 = vrot.slane %v1124_v2, %v1164_v22  ;;  %v1126_v8 = vadd.f32 %v1995_v34, %v1096_v4  ;;  %v1241_v22 = vsub.s32 %v1238_v40, %v1989_v1 }
 0x192   :  { %v1102_v21 = vpop.xlane.xlu1 %1101 }
 0x193   :  { %v1167_v53 = vsel %vm1166_vm5, %v1165_v6, %v1160_v35  ;;  %v1179_v39 = vrot.slane %v1126_v8, %v1178_v36  ;;  %v1129_v46 = vadd.f32 %v1995_v34, %v1102_v21  ;;  %v1248_v6 = vsub.s32 %v1245_v58, %v1989_v1 }
 0x194   :  { %v1104_v10 = vpop.xlane.xlu0 %1103  ;;  %v1174_v30 = vsel %vm1173_vm6, %v1172_v12, %v1167_v53  ;;  %v1255_v8 = vsub.s32 %v1252_v19, %v1989_v1 }
 0x195   :  { %v1181_v41 = vsel %vm1180_vm7, %v1179_v39, %v1174_v30  ;;  %v1130_v28 = vadd.f32 %v1995_v34, %v1104_v10  ;;  %v1200_v54 = vrot.slane %v1129_v46, %v1199_v24 }
 0x196   :  { %v1098_v13 = vpop.xlane.xlu1 %1097 }
 0x197   :  { %v1127_v38 = vadd.f32 %v1995_v34, %v1098_v13  ;;  %v1207_v60 = vrot.slane %v1130_v28, %v1206_v27 }
 0x198   :  { %v1100_v45 = vpop.xlane.xlu0 %1099 }
 0x199   :  { %v1186_v14 = vrot.slane %v1127_v38, %v1185_v37  ;;  %v1128_v15 = vadd.f32 %v1995_v34, %v1100_v45  ;;  %v1262_v37 = vsub.s32 %v1259_v7, %v1989_v1 }
 0x19a   :  { %v1110_v9 = vpop.xlane.xlu1 %1109 }
 0x19b   :  { %v1188_v47 = vsel %vm1187_vm8, %v1186_v14, %v1181_v41  ;;  %v1193_v48 = vrot.slane %v1128_v15, %v1192_v42  ;;  %v1133_v18 = vadd.f32 %v1995_v34, %v1110_v9 }
 0x19c   :  { %v1112_v52 = vpop.xlane.xlu0 %1111 }
 0x19d   :  { %v1195_v55 = vsel %vm1194_vm9, %v1193_v48, %v1188_v47  ;;  %v1134_v61 = vadd.f32 %v1995_v34, %v1112_v52  ;;  %v1228_v3 = vrot.slane %v1133_v18, %v1227_v57 }
 0x19e   :  { %v1106_v16 = vpop.xlane.xlu1 %1105  ;;  %v1202_v51 = vsel %vm1201_vm10, %v1200_v54, %v1195_v55 }
 0x19f   :  { %v1131_v29 = vadd.f32 %v1995_v34, %v1106_v16  ;;  %v1209_v32 = vsel %vm1208_vm11, %v1207_v60, %v1202_v51  ;;  %v1235_v4 = vrot.slane %v1134_v61, %v1234_v43 }
 0x1a0   :  { %v1108_v59 = vpop.xlane.xlu0 %1107 }
 0x1a1   :  { %v1214_v63 = vrot.slane %v1131_v29, %v1213_v56  ;;  %v1132_v0 = vadd.f32 %v1995_v34, %v1108_v59 }
 0x1a2   :  { %v1114_v11 = vpop.xlane.xlu1 %1113 }
 0x1a3   :  { %v1216_v20 = vsel %vm1215_vm12, %v1214_v63, %v1209_v32  ;;  %v1221_v33 = vrot.slane %v1132_v0, %v1220_v31  ;;  %v1135_v2 = vadd.f32 %v1995_v34, %v1114_v11 }
 0x1a5   :  { %v1223_v5 = vsel %vm1222_vm13, %v1221_v33, %v1216_v20  ;;  %v1242_v36 = vrot.slane %v1135_v2, %v1241_v22 }
 0x1a6   :  { %v1230_v35 = vsel %vm1229_vm14, %v1228_v3, %v1223_v5  ;;  %v1118_v21 = vpop.xlane.xlu1 %1117  ;;  %v1116_v23 = vpop.xlane.xlu0 %1115 }
 0x1a7   :  { %v1237_v53 = vsel %vm1236_vm15, %v1235_v4, %v1230_v35  ;;  %v1137_v17 = vadd.f32 %v1995_v34, %v1118_v21  ;;  %v1136_v10 = vadd.f32 %v1995_v34, %v1116_v23 }
 0x1a8   :  { %v1244_v39 = vsel %vm1243_vm0, %v1242_v36, %v1237_v53 }
 0x1a9   :  { %v1249_v12 = vrot.slane %v1136_v10, %v1248_v6  ;;  %v1256_v13 = vrot.slane %v1137_v17, %v1255_v8 }
 0x1aa   :  { %v1120_v30 = vpop.xlane.xlu0 %1119 }
 0x1ab   :  { %v1138_v62 = vadd.f32 %v1995_v34, %v1120_v30  ;;  %v1251_v38 = vsel %vm1250_vm1, %v1249_v12, %v1244_v39 }
 0x1ac   :  { %v1258_v24 = vsel %vm1257_vm2, %v1256_v13, %v1251_v38 }
 0x1ad   :  { %v1263_v42 = vrot.slane %v1138_v62, %v1262_v37 }
 0x1af   :  { %v1265_v26 = vsel %vm1264_vm3, %v1263_v42, %v1258_v24 }
 0x1b0   :  { %1267 = vst [vmem:[#allocation3] sm:$0x1] %v1265_v26 }
 0x1b1   :  { %1555 = shalt.err (!%p1552_p4)
}
 0x1b2   :  { %1277 = dma.vmem_to_hbm [thread:$0]  %s1275_s21, 16, %s2059_s13, [#allocation4]  }
 0x1b3   :  { %1564 = dma.done.wait [#allocation4], 16  }
 0x1b4   :  { %1565 = vsyncadd [#allocation4], 4294967280 }
 0x1b5   :  { %1281 = vsyncpa [#allocation4], 1 }

</bundles_post_ra>
